<compile_context>
chip_gen: v6e
topology: v6e:2x2x1
jax: 0.10.0
libtpu: 0.0.40
codegen_flags: <defaults>
</compile_context>

<pallas_src>
import jax
import jax.numpy as jnp
from jax.experimental import pallas as pl
from jax.experimental.pallas import tpu as pltpu


def _round_up(x, m):
    return ((x + m - 1) // m) * m


def _cdiv(a, b):
    return (a + b - 1) // b


def _make_rope_cache_kernel(rows_per_packed):
    """Kernel over packed rows: each output row holds `rows_per_packed` seq rows."""
    kf = float(rows_per_packed)

    def kernel(tab_ref, cos_ref, sin_ref):
        # tab_ref: (2, KD) f32. Row 0: per-lane seq-row offset (l // dim).
        #                       Row 1: per-lane inv_freq (duplicated halves).
        # cos_ref/sin_ref: (TP, KD) in the consumer dtype, lane-dense (KD % 128 == 0
        # for the common head dims).
        tp, kd = cos_ref.shape
        p = jax.lax.broadcasted_iota(jnp.int32, (tp, kd), 0)
        p = (p + pl.program_id(0) * tp).astype(jnp.float32)     # global packed row
        pos = p * kf + tab_ref[0:1, :]                           # absolute seq position
        emb = pos * tab_ref[1:2, :]                              # t * inv_freq
        cos_ref[...] = jnp.cos(emb).astype(cos_ref.dtype)
        sin_ref[...] = jnp.sin(emb).astype(sin_ref.dtype)

    return kernel


def _build_cos_sin_cache(seq_len, dim, base, dtype=jnp.float32):
    """Build (1, 1, padded_seq, dim) cos/sin caches with a tiled Pallas kernel."""
    assert dim % 2 == 0
    dtype = jnp.dtype(dtype)
    half = dim // 2

    # Fold k consecutive seq rows into the lane axis so the output is lane-dense
    # (KD is a multiple of 128 for dim in {32, 64, 128, 256, ...}).
    k = 128 // dim if (dim <= 128 and 128 % dim == 0) else 1
    KD = k * dim

    # --- tile selection over packed rows -----------------------------------
    pr_needed = _cdiv(seq_len, k)
    # ~2 MiB per output block, 8-row aligned.
    tp_cap = max(8, ((2 * 1024 * 1024) // (KD * dtype.itemsize)) // 8 * 8)
    # Keep >= ~4 grid steps when there is enough work (v7x megacore sharding).
    tp = max(8, min(tp_cap, _round_up(_cdiv(pr_needed, 4), 8)))
    pr_padded = _round_up(pr_needed, tp)
    grid = (pr_padded // tp,)
    padded_seq = pr_padded * k

    # --- tiny per-lane constant table ---------------------------------------
    inv_freq = 1.0 / (base ** (jnp.arange(0, dim, 2, dtype=jnp.float32) / dim))  # (half,)
    lanes = jnp.arange(KD, dtype=jnp.int32)
    lane_rowoff = (lanes // dim).astype(jnp.float32)          # which folded seq row
    lane_invf = inv_freq[lanes % half]                        # duplicated halves baked in
    tab = jnp.stack([lane_rowoff, lane_invf], axis=0)         # (2, KD) f32

    # 2 outputs x 2 pipeline buffers x block, plus the tiny table + headroom.
    out_block_bytes = tp * KD * dtype.itemsize
    vmem_limit = int(max(4 * 1024 * 1024, 4 * out_block_bytes + 2 * 1024 * 1024))

    cos_p, sin_p = pl.pallas_call(
        _make_rope_cache_kernel(k),
        out_shape=(
            jax.ShapeDtypeStruct((pr_padded, KD), dtype),
            jax.ShapeDtypeStruct((pr_padded, KD), dtype),
        ),
        grid=grid,
        in_specs=[pl.BlockSpec((2, KD), lambda i: (0, 0))],
        out_specs=(
            pl.BlockSpec((tp, KD), lambda i: (i, 0)),
            pl.BlockSpec((tp, KD), lambda i: (i, 0)),
        ),
        compiler_params=pltpu.CompilerParams(
            dimension_semantics=("parallel",),
            vmem_limit_bytes=vmem_limit,
        ),
    )(tab)

    # Row-major contiguous reshape back to (padded_seq, dim): free (no data movement).
    cos = cos_p.reshape(padded_seq, dim)[None, None, :, :]
    sin = sin_p.reshape(padded_seq, dim)[None, None, :, :]
    return cos, sin, padded_seq


class LlamaRotaryEmbedding:
    """JAX/Pallas port of the PyTorch LlamaRotaryEmbedding module."""

    def __init__(self, dim, max_position_embeddings=2048, base=10000,
                 dtype=jnp.float32):
        self.dim = dim
        self.max_position_embeddings = max_position_embeddings
        self.base = float(base)
        self._set_cos_sin_cache(seq_len=max_position_embeddings,
                                dtype=jnp.dtype(dtype))

    def _set_cos_sin_cache(self, seq_len, dtype):
        cos, sin, padded = _build_cos_sin_cache(
            seq_len, self.dim, self.base, dtype=dtype
        )
        self.cos_cached = cos
        self.sin_cached = sin
        self.cached_dtype = jnp.dtype(dtype)
        # Cache covers the padded (tile-aligned) length so nearby seq_lens reuse
        # the same compiled kernel and cached arrays.
        self.max_seq_len_cached = padded
        # Memoized per-dtype casts of the full cache (avoids a full-cache
        # astype pass on every forward call with a mismatched dtype).
        self._dtype_views = {self.cached_dtype: (cos, sin)}

    def _views_for(self, dtype):
        dtype = jnp.dtype(dtype)
        if dtype not in self._dtype_views:
            self._dtype_views[dtype] = (
                self.cos_cached.astype(dtype),
                self.sin_cached.astype(dtype),
            )
        return self._dtype_views[dtype]

    def __call__(self, dtype, seq_len=None):
        if seq_len is None:
            seq_len = self.max_seq_len_cached
        dtype = jnp.dtype(dtype)
        if seq_len > self.max_seq_len_cached:
            # Rebuild directly in the consumer dtype (as PyTorch does on rebuild),
            # growing geometrically (>= 2x) to avoid rebuild/retrace churn as
            # seq_len creeps up.
            target = max(seq_len, 2 * self.max_seq_len_cached)
            self._set_cos_sin_cache(seq_len=target, dtype=dtype)
        cos, sin = self._views_for(dtype)
        return cos[:, :, :seq_len, :], sin[:, :, :seq_len, :]


def _reference_cos_sin(seq_len, dim, base, dtype):
    inv_freq = 1.0 / (base ** (jnp.arange(0, dim, 2, dtype=jnp.float32) / dim))
    t = jnp.arange(seq_len, dtype=jnp.float32)
    freqs = jnp.einsum("i,j->ij", t, inv_freq)
    emb = jnp.concatenate([freqs, freqs], axis=-1)
    return (
        jnp.cos(emb)[None, None].astype(dtype),
        jnp.sin(emb)[None, None].astype(dtype),
    )


if __name__ == "__main__":
    # Small, deterministic configuration.
    dim = 32
    max_position_embeddings = 64
    base = 10000

    # Dummy hidden-states tensor (batch=2, seq=8, hidden=32) of the kind the
    # rotary embedding would be applied to; its seq axis drives seq_len.
    key = jax.random.PRNGKey(0)
    x = jax.random.normal(key, (2, 8, dim), dtype=jnp.float32)
    seq_len = x.shape[1]

    rope = LlamaRotaryEmbedding(dim, max_position_embeddings, base)
    cos, sin = rope(dtype=jnp.float32, seq_len=seq_len)
    cos = jax.block_until_ready(cos)
    sin = jax.block_until_ready(sin)

    assert cos.shape == (1, 1, seq_len, dim)
    assert sin.shape == (1, 1, seq_len, dim)
    assert cos.dtype == jnp.float32 and sin.dtype == jnp.float32

    ref_cos, ref_sin = _reference_cos_sin(seq_len, dim, base, jnp.float32)
    assert jnp.allclose(cos, ref_cos, atol=1e-5, rtol=1e-5)
    assert jnp.allclose(sin, ref_sin, atol=1e-5, rtol=1e-5)

    # Exercise the "seq_len > max_seq_len_cached" rebuild path (geometric growth).
    long_seq = max_position_embeddings + 16
    cos_l, sin_l = rope(dtype=jnp.float32, seq_len=long_seq)
    cos_l = jax.block_until_ready(cos_l)
    sin_l = jax.block_until_ready(sin_l)
    ref_cos_l, ref_sin_l = _reference_cos_sin(long_seq, dim, base, jnp.float32)
    assert cos_l.shape == (1, 1, long_seq, dim)
    assert jnp.allclose(cos_l, ref_cos_l, atol=1e-5, rtol=1e-5)
    assert jnp.allclose(sin_l, ref_sin_l, atol=1e-5, rtol=1e-5)

    # Exercise the memoized per-dtype cast path (f32 cache, bf16 consumer).
    cos_m, sin_m = rope(dtype=jnp.bfloat16, seq_len=seq_len)
    cos_m = jax.block_until_ready(cos_m)
    assert cos_m.dtype == jnp.bfloat16 and sin_m.dtype == jnp.bfloat16
    assert jnp.allclose(cos_m.astype(jnp.float32), ref_cos, atol=1e-2, rtol=1e-2)

    # Exercise the in-kernel consumer-dtype path (bf16 cache emitted directly).
    rope_bf16 = LlamaRotaryEmbedding(dim, max_position_embeddings, base,
                                     dtype=jnp.bfloat16)
    cos_b, sin_b = rope_bf16(dtype=jnp.bfloat16, seq_len=seq_len)
    cos_b = jax.block_until_ready(cos_b)
    sin_b = jax.block_until_ready(sin_b)
    assert cos_b.dtype == jnp.bfloat16 and sin_b.dtype == jnp.bfloat16
    assert jnp.allclose(cos_b.astype(jnp.float32), ref_cos, atol=1e-2, rtol=1e-2)
    assert jnp.allclose(sin_b.astype(jnp.float32), ref_sin, atol=1e-2, rtol=1e-2)

    # Sanity-check the other lane-folding regimes (k=2 and k=1 paths).
    for d_chk in (64, 128):
        rope_chk = LlamaRotaryEmbedding(d_chk, 16, base)
        c_chk, s_chk = rope_chk(dtype=jnp.float32, seq_len=16)
        c_chk = jax.block_until_ready(c_chk)
        rc, rs = _reference_cos_sin(16, d_chk, base, jnp.float32)
        assert jnp.allclose(c_chk, rc, atol=1e-5, rtol=1e-5)
        assert jnp.allclose(s_chk, rs, atol=1e-5, rtol=1e-5)

    print("KERNEL_OK")
</pallas_src>

<mosaic_0001>
module attributes {stable_mosaic.version = 11 : i64} {
  func.func @kernel(%arg0: i32, %arg1: memref<2x128xf32, #tpu.memory_space<vmem>>, %arg2: memref<8x128xf32, #tpu.memory_space<vmem>>, %arg3: memref<8x128xf32, #tpu.memory_space<vmem>>) attributes {dimension_semantics = [#tpu.dimension_semantics<parallel>], iteration_bounds = array<i64: 2>, scalar_prefetch = 0 : i64, scratch_operands = 0 : i64, tpu.core_type = #tpu.core_type<tc>, window_params = [{pipeline_mode = #tpu.pipeline_mode<synchronous>, transform_indices = @transform_0, window_bounds = array<i64: 2, 128>}, {transform_indices = @transform_1, window_bounds = array<i64: 8, 128>}, {transform_indices = @transform_2, window_bounds = array<i64: 8, 128>}]} {
    %0 = tpu.iota {dimensions = array<i32: 0>} : vector<8x128xi32>
    %c8_i32 = arith.constant 8 : i32
    %1 = arith.muli %arg0, %c8_i32 : i32
    %2 = vector.broadcast %1 : i32 to vector<8x128xi32>
    %3 = arith.addi %0, %2 : vector<8x128xi32>
    %4 = arith.sitofp %3 : vector<8x128xi32> to vector<8x128xf32>
    %cst = arith.constant 4.000000e+00 : f32
    %5 = vector.broadcast %cst : f32 to vector<8x128xf32>
    %6 = arith.mulf %4, %5 : vector<8x128xf32>
    %c0 = arith.constant 0 : index
    %c0_0 = arith.constant 0 : index
    %7 = vector.load %arg1[%c0, %c0_0] : memref<2x128xf32, #tpu.memory_space<vmem>>, vector<1x128xf32>
    %8 = vector.broadcast %7 : vector<1x128xf32> to vector<8x128xf32>
    %9 = arith.addf %6, %8 : vector<8x128xf32>
    %c1 = arith.constant 1 : index
    %c0_1 = arith.constant 0 : index
    %10 = vector.load %arg1[%c1, %c0_1] : memref<2x128xf32, #tpu.memory_space<vmem>>, vector<1x128xf32>
    %11 = vector.broadcast %10 : vector<1x128xf32> to vector<8x128xf32>
    %12 = arith.mulf %9, %11 : vector<8x128xf32>
    %13 = math.cos %12 : vector<8x128xf32>
    %c0_2 = arith.constant 0 : index
    %c0_3 = arith.constant 0 : index
    %14 = vector.load %arg2[%c0_2, %c0_3] : memref<8x128xf32, #tpu.memory_space<vmem>>, vector<8x128xf32>
    tpu.vector_store %arg2[%c0_2, %c0_3], %13 {strides = array<i32>} : memref<8x128xf32, #tpu.memory_space<vmem>>, vector<8x128xf32>,
    %15 = math.sin %12 : vector<8x128xf32>
    %c0_4 = arith.constant 0 : index
    %c0_5 = arith.constant 0 : index
    %16 = vector.load %arg3[%c0_4, %c0_5] : memref<8x128xf32, #tpu.memory_space<vmem>>, vector<8x128xf32>
    tpu.vector_store %arg3[%c0_4, %c0_5], %15 {strides = array<i32>} : memref<8x128xf32, #tpu.memory_space<vmem>>, vector<8x128xf32>,
    return
  }
  func.func @transform_0(%arg0: i32) -> (i32, i32) {
    %c0_i32 = arith.constant 0 : i32
    %c0_i32_0 = arith.constant 0 : i32
    %c0_i32_1 = arith.constant 0 : i32
    return %c0_i32, %c0_i32_0 : i32, i32
  }
  func.func @transform_1(%arg0: i32) -> (i32, i32) {
    %c0_i32 = arith.constant 0 : i32
    %c0_i32_0 = arith.constant 0 : i32
    return %arg0, %c0_i32 : i32, i32
  }
  func.func @transform_2(%arg0: i32) -> (i32, i32) {
    %c0_i32 = arith.constant 0 : i32
    %c0_i32_0 = arith.constant 0 : i32
    return %arg0, %c0_i32 : i32, i32
  }
}

</mosaic_0001>

<bundles_post_ra>
// kernel: tpu_custom_call.1
= control target key start
LH: loop header
LB: loop body
LE: loop exit
PB: predicated region body
PF: predicated region fallthrough
CT: control target
= control target key end

     0   :  { %8 = vsyncpa [#allocation3], 0  ;;  %s902_s0 = inlined_call_operand.hbm [shape: f32[2,128], index: 0, kind: input, shape index: {}]   ;;  %s903_s1 = inlined_call_operand.hbm [shape: f32[16,128], index: 1, kind: output, shape index: {0}]   ;;  %s904_s2 = inlined_call_operand.hbm [shape: f32[16,128], index: 2, kind: output, shape index: {1}]  }
   0x1   :  { %9 = vsyncpa [#allocation4], 0 }
   0x2   :  { %11 = vsyncpa [#allocation4 + $0x1], 0 }
   0x3   :  { %12 = vsyncpa [#allocation7], 0 }
   0x4   :  { %14 = vsyncpa [#allocation7 + $0x1], 0  ;;  %s736_s9 = smov 0   ;;  %s738_s10 = smov 0  }
   0x5   :  { %s740_s11 = smov 0   ;;  %s742_s12 = smov 0  }
   0x6 LB: > { %s757_s13 = sadd.s32 4294967295, %s710_s12   ;;  %s497_s14 = sadd.s32 4294967294, %s710_s12   ;;  %s710_s12 = sphi %s742_s12, %s912_s12   ;;  %s706_s11 = sphi %s740_s11, %s911_s11   ;;  %s702_s10 = sphi %s738_s10, %s910_s10   ;;  %s698_s9 = sphi %s736_s9, %s909_s9  }
   0x7   : > { %s761_s15 = sadd.s32 1, %s710_s12   ;;  %s48_s16 = sadd.s32 1, %s706_s11 }
   0x8   : > { %s45_s17 = ssub.s32 %s710_s12, %s761_s15  ;;  %p58_p0 = scmp.ne.s32.totalorder %s706_s11, %s702_s10 }
   0x9   : > { %p46_p1 = scmp.eq.s32.totalorder %s45_s17, 0  ;;  %p59_p2 = scmp.eq.s32.totalorder %s757_s13, 1 }
   0xa   : > { %p64_p3 = scmp.ne.s32.totalorder %s702_s10, %s698_s9  ;;  %p65_p4 = scmp.eq.s32.totalorder %s497_s14, 1 }
   0xb   : > { %s772_s18 = scalar_select %p46_p1, %s706_s11, %s48_s16  }
   0xc   : > { %p774_p5 = por %p59_p2, %p58_p0  ;;  %p778_p6 = por %p65_p4, %p64_p3 }
   0xd   : > { %p498_p7 = scmp.ge.s32.totalorder %s710_s12, 1  ;;  %p98_p8 = scmp.lt.s32.totalorder %s710_s12, 3 }
   0xe   : > { %s906_s20 = scalar_select %p778_p6, 1, 0 }
   0xf   : > { %p544_p9 = scmp.eq.s32.totalorder %s757_s13, 0  ;;  %p785_p10 = pnand %p498_p7, %p98_p8 }
  0x10   : > { %s712_s22 = smov [#allocation2]  }
  0x11   : > { %s111_s23 = sshll.u32 %s712_s22, 4  ;;  %p533_p11 = pneg %p785_p10  ;;  %s112_s23 = int_to_ptr.vmem [resolvable:$true] %s111_s23 }
  0x12   : > { %s601_s24 = scalar_lea.vmem %s112_s23, 32  ;;  %p609_p3 = scmp.lt.s32.totalorder %s112_s23, %s112_s23 }
  0x13   : > { %p534_p12 = pnand %p544_p9, %p533_p11  ;;  %p602_p0 = scmp.ne.s32.totalorder %s112_s23, %s601_s24 }
  0x14   : > { %p610_p4 = scmp.lt.s32.totalorder %s601_s24, %s601_s24 }
  0x15   : > { %p592_p13 = pneg %p534_p12 }
  0x16   : > { %p611_p6 = por %p610_p4, %p609_p3 }
  0x17   : > { %p604_p1 = pnand %p602_p0, %p592_p13 }
  0x19   : > { %p605_p2 = pneg %p604_p1 }
  0x1b   : > { %p612_p7 = pnand %p611_p6, %p605_p2 }
  0x1d   : > { %615 = shalt.err (!%p612_p7)
}
  0x1e   : > { %536 = dma.hbm_to_vmem [thread:$0]  (!%p534_p12), %s902_s0, 32, %s112_s23, [#allocation3]  }
  0x1f   : > { %124 = sbr.rel (%p785_p10) target bundleno = 169 (0xa9), region = 24 }
  0x24   : > { %685 = dma.done.wait (%p544_p9), [#allocation3], 32  }
  0x25   : > { %687 = vsyncadd (%p544_p9), [#allocation3], 4294967264  ;;  %v146_v0 = vlaneseq  ;;  %s504_s27 = sshll.u32 %s757_s13, 3  ;;  %v505_v5 = vld [vmem:[#allocation2] ss:$0 sm:$0xff]  ;;  %s824_s28 = sand.u32 1, %s702_s10  }
  0x26   : > { %v149_v1 = vstv %s504_s27  ;;  %v506_v7 = vld [vmem:[#allocation2 + $0x1] ss:$0 sm:$0xff]  ;;  %v713_v21 = vmov 683565275   ;;  %v714_v23 = vmov 2475754826  }
  0x27   : > { %v147_v2 = vshrl.u32 %v146_v0, 7  ;;  %v715_v25 = vmov 2131351028   ;;  %v716_v27 = vmov 2102212464   ;;  %s502_s29 = sshll.u32 %s824_s28, 3 }
  0x28   : > { %v717_v29 = vmov 920167782   ;;  %v718_v36 = vmov 1326507024   ;;  %s138_s30 = scalar_lea.vmem [#allocation5], %s502_s29  ;;  %s145_s4 = scalar_lea.vmem [#allocation6], %s502_s29 }
  0x29   : > { %v150_v3 = vadd.s32 %v149_v1, %v147_v2  ;;  %s393_s3 = sshll.u32 %s138_s30, 4  ;;  %s406_s5 = sshll.u32 %s145_s4, 4  ;;  %s829_s3 = int_to_ptr.vmem [resolvable:$true] %s393_s3  ;;  %s831_s5 = int_to_ptr.vmem [resolvable:$true] %s406_s5 }
  0x2a   : > { %s517_s6 = sshll.u32 %s757_s13, 7  ;;  %s375_s21 = scalar_lea.sflag [#allocation4], %s824_s28 }
  0x2b   : > { %v151_v4 = vcvt.s32.f32 %v150_v3  ;;  %s836_s13 = scalar_lea.hbm %s903_s1, %s517_s6  ;;  %s841_s17 = scalar_lea.hbm %s904_s2, %s517_s6 }
  0x2c   : > { %s616_s22 = scalar_lea.vmem %s829_s3, 128  ;;  %s719_s23 = smov [#allocation5]  }
  0x2d   : > { %v152_v6 = vmul.f32 4.0, %v151_v4  ;;  %p617_p6 = scmp.ne.s32.totalorder %s829_s3, %s616_s22  ;;  %s620_s24 = sshll.u32 %s719_s23, 4  ;;  %s621_s24 = int_to_ptr.vmem [resolvable:$false] %s620_s24 }
  0x2e   : > { %s622_s25 = scalar_lea.vmem %s621_s24, 256  ;;  %p623_p10 = scmp.lt.s32.totalorder %s829_s3, %s621_s24 }
  0x2f   : > { %v158_v8 = vadd.f32 %v505_v5, %v152_v6  ;;  %p618_p8 = pnand %p617_p6, %p774_p5  ;;  %p624_p11 = scmp.lt.s32.totalorder %s622_s25, %s616_s22 }
  0x31   : > { %v803_v9 = vmul.f32 %v506_v7, %v158_v8  ;;  %p619_p9 = pneg %p618_p8  ;;  %p625_p12 = por %p624_p11, %p623_p10 }
  0x33   : > { %v168_v10 = vand.u32 2139095040, %v803_v9  ;;  %v165_v12 = vand.u32 2147483647, %v803_v9  ;;  %vm167_vm7 = vcmp.lt.s32.totalorder %v803_v9, 0  ;;  %vm257_vm15 = vweird.f32 %v803_v9  ;;  %p626_p13 = pnand %p625_p12, %p619_p9 }
  0x35   : > { %v169_v11 = vshrl.u32 %v168_v10, 23  ;;  %v172_v15 = vand.u32 8388607, %v165_v12  ;;  %vm166_vm8 = vcmp.le.f32.partialorder %v165_v12, 0.7853982 }
  0x37   : > { %v507_v13 = vadd.s32 4294967169, %v169_v11  ;;  %v173_v18 = vor.u32 8388608, %v172_v15 }
  0x39   : > { %v175_v14 = vadd.s32 1, %v507_v13  ;;  %v213_v38 = vshll.u32 %v173_v18, 8 }
  0x3b   : > { %vm176_vm0 = vcmp.gt.s32.totalorder %v175_v14, 0 }
  0x3c   : > { %v177_v16 = vsel %vm176_vm0, %v175_v14, 0 }
  0x3d   : > { %v179_v17 = vand.u32 31, %v177_v16  ;;  %v178_v19 = vshrl.u32 %v177_v16, 5 }
  0x3f   : > { %v180_v20 = vsub.s32 32, %v179_v17  ;;  %v182_v22 = vshll.u32 %v713_v21, %v179_v17  ;;  %v185_v24 = vshll.u32 %v714_v23, %v179_v17  ;;  %v188_v26 = vshll.u32 %v715_v25, %v179_v17 }
  0x40   : > { %v191_v28 = vshll.u32 %v716_v27, %v179_v17  ;;  %v194_v30 = vshll.u32 %v717_v29, %v179_v17  ;;  %vm197_vm1 = vcmp.lt.s32.totalorder %v178_v19, 1  ;;  %vm200_vm2 = vcmp.lt.s32.totalorder %v178_v19, 4 }
  0x41   : > { %v181_v31 = vshrl.u32 %v713_v21, %v180_v20  ;;  %v183_v32 = vshrl.u32 %v714_v23, %v180_v20  ;;  %v186_v33 = vshrl.u32 %v715_v25, %v180_v20  ;;  %v189_v34 = vshrl.u32 %v716_v27, %v180_v20 }
  0x42   : > { %v192_v35 = vshrl.u32 %v717_v29, %v180_v20  ;;  %v195_v37 = vshrl.u32 %v718_v36, %v180_v20  ;;  %vm198_vm3 = vcmp.lt.s32.totalorder %v178_v19, 2  ;;  %vm199_vm4 = vcmp.lt.s32.totalorder %v178_v19, 3 }
  0x43   : > { %v184_v39 = vor.u32 %v183_v32, %v182_v22  ;;  %v187_v40 = vor.u32 %v186_v33, %v185_v24  ;;  %v190_v41 = vor.u32 %v189_v34, %v188_v26 }
  0x44   : > { %v193_v42 = vor.u32 %v192_v35, %v191_v28  ;;  %v196_v43 = vor.u32 %v195_v37, %v194_v30 }
  0x45   : > { %v201_v44 = vsel %vm197_vm1, %v181_v31, %v184_v39  ;;  %v202_v45 = vsel %vm200_vm2, %v190_v41, 2102212464  ;;  %v205_v46 = vsel %vm197_vm1, %v184_v39, %v187_v40  ;;  %v209_v47 = vsel %vm197_vm1, %v187_v40, %v190_v41 }
  0x46   : > { %v203_v48 = vsel %vm199_vm4, %v187_v40, %v202_v45  ;;  %v206_v49 = vsel %vm200_vm2, %v193_v42, 920167782  ;;  %v210_v50 = vsel %vm200_vm2, %v196_v43, 1326507024 }
  0x47   : > { %v207_v51 = vsel %vm199_vm4, %v190_v41, %v206_v49  ;;  %v211_v52 = vsel %vm199_vm4, %v193_v42, %v210_v50  ;;  %v204_v53 = vsel %vm198_vm3, %v201_v44, %v203_v48 }
  0x48   : > { %v208_v54 = vsel %vm198_vm3, %v205_v46, %v207_v51  ;;  %v212_v55 = vsel %vm198_vm3, %v209_v47, %v211_v52  ;;  %v220_v60 = vmul.u32 %v213_v38, %v204_v53 }
  0x49   : > { %v809_v56 = vmul.u32.u64.low %v213_v38, %v212_v55  ;;  %v810_v57 = vmul.u32.u64.high %v213_v38, %v212_v55, %v809_v56  ;;  %v812_v58 = vmul.u32.u64.low %v213_v38, %v208_v54  ;;  %v813_v59 = vmul.u32.u64.high %v213_v38, %v208_v54, %v812_v58 }
  0x4b   : > { %vm222_vm5 = vc.u32 %v810_v57, %v812_v58  ;;  %v223_v61 = vadd.s32 1, %v813_v59  ;;  %v221_v8 = vadd.s32 %v812_v58, %v810_v57 }
  0x4d   : > { %v224_v62 = vsel %vm222_vm5, %v223_v61, %v813_v59 }
  0x4e   : > { %v225_v63 = vadd.s32 %v224_v62, %v220_v60 }
  0x50   : > { %v226_v0 = vadd.s32 536870912, %v225_v63 }
  0x52   : > { %v227_v1 = vshrl.u32 %v226_v0, 30 }
  0x54   : > { %v228_v2 = vshll.u32 %v227_v1, 30  ;;  %v251_v23 = vsub.s32 4, %v227_v1 }
  0x56   : > { %v229_v3 = vsub.s32 %v225_v63, %v228_v2  ;;  %v252_v26 = vsel %vm167_vm7, %v251_v23, %v227_v1 }
  0x57   : > { %v254_v28 = vsel %vm166_vm8, 0, %v252_v26 }
  0x58   : > { %v231_v4 = vsub.s32 0, %v229_v3  ;;  %v362_v29 = vadd.s32 3, %v254_v28  ;;  %v258_v30 = vand.u32 3, %v254_v28 }
  0x5a   : > { %v508_v5 = vmin.u32 %v231_v4, %v229_v3  ;;  %v363_v31 = vand.u32 3, %v362_v29  ;;  %vm263_vm9 = vcmp.eq.s32.totalorder %v258_v30, 2  ;;  %vm260_vm11 = vcmp.eq.s32.totalorder %v258_v30, 0 }
  0x5b   : > { %vm259_vm13 = vcmp.lt.s32.totalorder %v258_v30, 2 }
  0x5c   : > { %v233_v6 = vclz %v508_v5  ;;  %vm368_vm10 = vcmp.eq.s32.totalorder %v363_v31, 2  ;;  %vm365_vm12 = vcmp.eq.s32.totalorder %v363_v31, 0  ;;  %vm364_vm14 = vcmp.lt.s32.totalorder %v363_v31, 2 }
  0x5e   : > { %v509_v7 = vadd.s32 4294967294, %v233_v6 }
  0x60   : > { %vm510_vm6 = vcmp.lt.s32.totalorder %v509_v7, 0 }
  0x61   : > { %v236_v10 = vsel %vm510_vm6, 0, %v509_v7 }
  0x62   : > { %v237_v11 = vsub.s32 32, %v236_v10  ;;  %v238_v13 = vshll.u32 %v229_v3, %v236_v10  ;;  %v241_v14 = vsub.s32 4294967266, %v236_v10 }
  0x64   : > { %v239_v15 = vshrl.u32 %v221_v8, %v237_v11  ;;  %v242_v16 = vadd.s32 127, %v241_v14 }
  0x66   : > { %v240_v17 = vor.u32 %v239_v15, %v238_v13  ;;  %v243_v18 = vshll.u32 %v242_v16, 23 }
  0x68   : > { %v244_v19 = vor.u32 4788187, %v243_v18  ;;  %v247_v20 = vcvt.s32.f32 %v240_v17 }
  0x6a   : > { %v245_v21 = vand.u32 2147483647, %v244_v19 }
  0x6c   : > { %v248_v22 = vmul.f32 %v247_v20, %v245_v21 }
  0x6e   : > { %v249_v24 = vxor.u32 2147483648, %v248_v22 }
  0x70   : > { %v250_v25 = vsel %vm167_vm7, %v249_v24, %v248_v22 }
  0x71   : > { %v253_v27 = vsel %vm166_vm8, %v803_v9, %v250_v25 }
  0x72   : > { %586 = vcosq.f32 %v253_v27 }
  0x73   : > { %588 = vsinq.f32 %v253_v27 }
  0x7f   : > { %v587_v32 = vpop.eup %586 }
  0x80   : > { %v589_v12 = vpop.eup %588  ;;  %v264_v33 = vxor.u32 2147483648, %v587_v32 }
  0x81   : > { %v261_v34 = vxor.u32 2147483648, %v589_v12 }
  0x82   : > { %v265_v35 = vsel %vm263_vm9, %v264_v33, %v589_v12  ;;  %v370_v36 = vsel %vm368_vm10, %v264_v33, %v589_v12 }
  0x83   : > { %v262_v37 = vsel %vm260_vm11, %v587_v32, %v261_v34  ;;  %v367_v38 = vsel %vm365_vm12, %v587_v32, %v261_v34 }
  0x84   : > { %v266_v39 = vsel %vm259_vm13, %v262_v37, %v265_v35  ;;  %v371_v40 = vsel %vm364_vm14, %v367_v38, %v370_v36 }
  0x85   : > { %v267_v9 = vsel %vm257_vm15, nan, %v266_v39  ;;  %v372_v41 = vsel %vm257_vm15, nan, %v371_v40 }
  0x86   : > { %268 = vst [vmem:[%s138_s30] sm:$0xff] %v267_v9  ;;  %373 = vst [vmem:[%s145_s4] sm:$0xff] %v372_v41 }
  0x87   : > { %629 = shalt.err (!%p626_p13)
}
  0x88   : > { %s630_s26 = scalar_lea.hbm %s836_s13, 128  ;;  %s634_s30 = scalar_lea.hbm %s903_s1, 256 }
  0x89   : > { %p631_p0 = scmp.ne.s32.totalorder %s836_s13, %s630_s26  ;;  %p635_p3 = scmp.lt.s32.totalorder %s836_s13, %s903_s1 }
  0x8a   : > { %p636_p4 = scmp.lt.s32.totalorder %s634_s30, %s630_s26 }
  0x8b   : > { %p632_p1 = pnand %p631_p0, %p774_p5 }
  0x8c   : > { %p637_p7 = por %p636_p4, %p635_p3 }
  0x8d   : > { %p633_p2 = pneg %p632_p1 }
  0x8f   : > { %p638_p6 = pnand %p637_p7, %p633_p2 }
  0x91   : > { %641 = shalt.err (!%p638_p6)
}
  0x92   : > { %529 = dma.vmem_to_hbm [thread:$0]  (%p774_p5), %s829_s3, 128, %s836_s13, %s375_s21  }
  0x93   : > { %s380_s7 = scalar_lea.sflag [#allocation7], %s824_s28  ;;  %s642_s8 = scalar_lea.vmem %s831_s5, 128 }
  0x94   : > { %p643_p8 = scmp.ne.s32.totalorder %s831_s5, %s642_s8  ;;  %s720_s14 = smov [#allocation6]  }
  0x95   : > { %s646_s16 = sshll.u32 %s720_s14, 4  ;;  %s647_s16 = int_to_ptr.vmem [resolvable:$false] %s646_s16 }
  0x96   : > { %p644_p9 = pnand %p643_p8, %p774_p5  ;;  %s648_s22 = scalar_lea.vmem %s647_s16, 256 }
  0x97   : > { %p649_p11 = scmp.lt.s32.totalorder %s831_s5, %s647_s16  ;;  %p650_p12 = scmp.lt.s32.totalorder %s648_s22, %s642_s8 }
  0x98   : > { %p645_p10 = pneg %p644_p9 }
  0x99   : > { %p651_p13 = por %p650_p12, %p649_p11 }
  0x9b   : > { %p652_p0 = pnand %p651_p13, %p645_p10 }
  0x9d   : > { %655 = shalt.err (!%p652_p0)
}
  0x9e   : > { %s656_s3 = scalar_lea.hbm %s841_s17, 128  ;;  %s660_s21 = scalar_lea.hbm %s904_s2, 256 }
  0x9f   : > { %p657_p1 = scmp.ne.s32.totalorder %s841_s17, %s656_s3  ;;  %p661_p4 = scmp.lt.s32.totalorder %s841_s17, %s904_s2 }
  0xa0   : > { %p662_p7 = scmp.lt.s32.totalorder %s660_s21, %s656_s3 }
  0xa1   : > { %p658_p2 = pnand %p657_p1, %p774_p5 }
  0xa2   : > { %p663_p6 = por %p662_p7, %p661_p4 }
  0xa3   : > { %p659_p3 = pneg %p658_p2 }
  0xa5   : > { %p664_p8 = pnand %p663_p6, %p659_p3 }
  0xa7   : > { %667 = shalt.err (!%p664_p8)
}
  0xa8   : > { %530 = dma.vmem_to_hbm [thread:$0]  (%p774_p5), %s831_s5, 128, %s841_s17, %s380_s7  }
  0xa9 PF: > { %p546_p9 = scmp.ge.s32.totalorder %s710_s12, 2  ;;  %s418_s25 = sand.u32 1, %s698_s9  }
  0xaa   : > { %p908_p10 = scmp.ne.s32.totalorder %s906_s20, 0  ;;  %s419_s26 = scalar_lea.sflag [#allocation4], %s418_s25 }
  0xac   : > { %p538_p11 = pnand %p546_p9, %p908_p10 }
  0xae   : > { %p539_p12 = pneg %p538_p11 }
  0xb0   : > { %689 = dma.done.wait (%p539_p12), %s419_s26, 128  }
  0xb1   : > { %691 = vsyncadd (%p539_p12), %s419_s26, 4294967168  ;;  %s428_s27 = scalar_lea.sflag [#allocation7], %s418_s25 }
  0xb2   : > { %693 = dma.done.wait (%p539_p12), %s428_s27, 128  }
  0xb3   : > { %695 = vsyncadd (%p539_p12), %s428_s27, 4294967168  ;;  %p17_p5 = scmp.ge.s32.totalorder %s761_s15, 4   ;;  %s909_s9 = smov %s702_s10 }
  0xb4   : > { %s910_s10 = smov %s706_s11  ;;  %s911_s11 = smov %s772_s18 }
  0xb5   : > { %s912_s12 = smov %s761_s15  ;;  %19 = sbr.rel (!%p17_p5) target bundleno = 6 (0x6), region = 78 }
  0xba   :  { %433 = vsyncpa [#allocation3], 1 }
  0xbb   :  { %435 = vsyncpa [#allocation3 + $0x1], 1 }
  0xbc   :  { %436 = vsyncpa [#allocation4], 1 }
  0xbd   :  { %438 = vsyncpa [#allocation4 + $0x1], 1 }
  0xbe   :  { %439 = vsyncpa [#allocation7], 1 }
  0xbf   :  { %441 = vsyncpa [#allocation7 + $0x1], 1 }

</bundles_post_ra>
